<compile_context>
chip_gen: v7x
topology: tpu7x:2x2x1
jax: 0.10.0
libtpu: 0.0.40
codegen_flags: <defaults>
</compile_context>

<pallas_src>
import functools

import numpy as np
import jax
import jax.numpy as jnp
from jax.experimental import pallas as pl
from jax.experimental.pallas import tpu as pltpu

DELTA = 1e-06
MOLLIFY = 0.0  # forward() default


def _sigmoid_flow_kernel(x_ref, p_ref, out_ref, *, k):
    """One (TN, D) tile of the sigmoidal flow.

    x_ref : (TN, D)      flow input, D mapped to lanes
    p_ref : (3K, TN, D)  params with the mixture-component axis leading:
                         [0:K] -> a-params, [K:2K] -> b-params, [2K:3K] -> w-params
    """
    x = x_ref[...].astype(jnp.float32)          # (TN, D)
    pa = p_ref[0:k].astype(jnp.float32)         # (K, TN, D)
    pb = p_ref[k:2 * k].astype(jnp.float32)
    pw = p_ref[2 * k:3 * k].astype(jnp.float32)

    # softplus(pa) + delta, single-exp stable form: max(x, 0) + log1p(exp(-|x|))
    a = jnp.maximum(pa, 0.0) + jnp.log1p(jnp.exp(-jnp.abs(pa))) + DELTA
    b = pb
    if MOLLIFY:  # exact PyTorch mollify mixing; no-op (and elided) at 0.0
        a = a * (1.0 - MOLLIFY) + 1.0 * MOLLIFY
        b = b * (1.0 - MOLLIFY)

    # softmax over the mixture-component axis (axis 0 in this layout);
    # normalization deferred: one precise divide on the reduced (TN, D) sums
    # instead of K per-element divides (keeps 1e-5 accuracy).
    pw_max = jnp.max(pw, axis=0, keepdims=True)
    e_w = jnp.exp(pw - pw_max)
    denom = jnp.sum(e_w, axis=0)                # (TN, D)

    # sigmoid via tanh: one EUP op instead of exp + precise reciprocal per element
    pre_sigm = a * x[None, :, :] + b            # (K, TN, D)
    sigm = 0.5 * (jnp.tanh(0.5 * pre_sigm) + 1.0)

    x_pre = jnp.sum(e_w * sigm, axis=0) / denom          # (TN, D)
    xpc = x_pre * (1.0 - DELTA) + DELTA * 0.5

    # log(100*x) - log(100) == log(x); the log(100) terms cancel in the logit.
    out_ref[...] = (jnp.log(xpc) - jnp.log1p(-xpc)).astype(out_ref.dtype)


def sigmoid_flow_channel_first(x, params_kf, num_ds_dim=4, block_rows=1024):
    """SigmoidFlow with params already in the kernel-native (3K, N, D) layout.

    x: (N, D) float, params_kf: (3K, N, D) float -> (N, D) f32 (or (N,) if D == 1).
    """
    n, d = x.shape
    k = num_ds_dim
    assert params_kf.shape == (3 * k, n, d)

    # Tile over N so the kernel is software-pipelined (DMA/compute overlap) and
    # scales beyond VMEM.  Each step moves ~(3K+2)*TN*D*4 bytes; TN <= 1024 keeps
    # the double-buffered working set well under v7x's 64 MiB VMEM (v5e/v6e can
    # go larger by raising block_rows).
    if n <= block_rows:
        tn, n_pad = n, n
    else:
        tn = max(8, (min(block_rows, n) // 8) * 8)
        n_pad = ((n + tn - 1) // tn) * tn

    xp, pp = x, params_kf
    if n_pad != n:
        # Zero padding is numerically safe here (produces finite logit(~0.5)).
        xp = jnp.pad(xp, ((0, n_pad - n), (0, 0)))
        pp = jnp.pad(pp, ((0, 0), (0, n_pad - n), (0, 0)))

    grid = (n_pad // tn,)
    out = pl.pallas_call(
        functools.partial(_sigmoid_flow_kernel, k=k),
        out_shape=jax.ShapeDtypeStruct((n_pad, d), jnp.float32),
        grid=grid,
        in_specs=[
            pl.BlockSpec((tn, d), lambda i: (i, 0)),
            pl.BlockSpec((3 * k, tn, d), lambda i: (0, i, 0)),
        ],
        out_specs=pl.BlockSpec((tn, d), lambda i: (i, 0)),
        compiler_params=pltpu.CompilerParams(
            dimension_semantics=("parallel",)),
    )(xp, pp)

    if n_pad != n:
        out = out[:n]
    # PyTorch does .squeeze(-1): only removes the last axis when D == 1.
    if d == 1:
        out = out.reshape(n)
    return out


def sigmoid_flow(x, dsparams, num_ds_dim=4, block_rows=1024):
    """Compat wrapper for the PyTorch layout: x (N, D), dsparams (N, D, 3K).

    Does a single layout pass (N, D, 3K) -> (3K, N, D) and calls the fused
    channel-first kernel (one parameter input, sliced in-kernel).  Producers
    that can emit (3K, N, D) directly should call sigmoid_flow_channel_first
    and skip this transpose entirely.
    """
    n, d = x.shape
    k = num_ds_dim
    assert dsparams.shape == (n, d, 3 * k)
    params_kf = jnp.transpose(dsparams, (2, 0, 1))   # (3K, N, D), one pass
    return sigmoid_flow_channel_first(x, params_kf, num_ds_dim=k,
                                      block_rows=block_rows)


def sigmoid_flow_ref(x, dsparams, num_ds_dim=4):
    """Pure-JAX reference mirroring the PyTorch forward exactly."""
    k = num_ds_dim
    a_ = jax.nn.softplus(dsparams[:, :, 0 * k:1 * k]) + DELTA
    b_ = dsparams[:, :, 1 * k:2 * k]
    w = jax.nn.softmax(dsparams[:, :, 2 * k:3 * k], axis=2)
    a = a_ * (1 - MOLLIFY) + 1.0 * MOLLIFY
    b = b_ * (1 - MOLLIFY) + 0.0 * MOLLIFY
    pre_sigm = a * x[:, :, None] + b
    sigm = jax.nn.sigmoid(pre_sigm)
    x_pre = jnp.sum(w * sigm, axis=2)
    xpc = x_pre * (1 - DELTA) + DELTA * 0.5
    lg = lambda t: jnp.log(t * 100.0) - np.log(100.0)
    return lg(xpc) - lg(1 - xpc)


# TODO(synk): the rest of iVAE (backbone/encoder/decoder MLPs, embedding,
# DenseSigmoidFlow/DDSF logdet path) is standard dense/XLA code and is not part
# of this Pallas kernel; only SigmoidFlow.forward is implemented here.

if __name__ == "__main__":
    key = jax.random.PRNGKey(0)

    # Case 1: vreg-aligned tile (8, 128), single grid step.
    # Case 2: iVAE-like small flow dim (s_dim=8, flow_dim=4), 4 pipelined steps.
    configs = [
        dict(n=8, d=128, k=4, block_rows=1024),
        dict(n=64, d=8, k=4, block_rows=16),
    ]
    for cfg in configs:
        n, d, k = cfg["n"], cfg["d"], cfg["k"]
        key, kx, kp = jax.random.split(key, 3)
        x = jax.random.normal(kx, (n, d), dtype=jnp.float32)
        dsparams = jax.random.normal(kp, (n, d, 3 * k), dtype=jnp.float32)

        out = sigmoid_flow(x, dsparams, num_ds_dim=k,
                           block_rows=cfg["block_rows"])
        out = jax.block_until_ready(out)

        ref = sigmoid_flow_ref(x, dsparams, num_ds_dim=k)
        np.testing.assert_allclose(np.asarray(out), np.asarray(ref),
                                   rtol=1e-5, atol=1e-5)

    print("KERNEL_OK")
</pallas_src>

<mosaic_0001>
module attributes {stable_mosaic.version = 11 : i64} {
  func.func @_sigmoid_flow_kernel(%arg0: i32, %arg1: memref<8x128xf32, #tpu.memory_space<vmem>>, %arg2: memref<12x8x128xf32, #tpu.memory_space<vmem>>, %arg3: memref<8x128xf32, #tpu.memory_space<vmem>>) attributes {dimension_semantics = [#tpu.dimension_semantics<parallel>], iteration_bounds = array<i64: 1>, scalar_prefetch = 0 : i64, scratch_operands = 0 : i64, tpu.core_type = #tpu.core_type<tc>, window_params = [{transform_indices = @transform_0, window_bounds = array<i64: 8, 128>}, {transform_indices = @transform_1, window_bounds = array<i64: 12, 8, 128>}, {transform_indices = @transform_2, window_bounds = array<i64: 8, 128>}]} {
    %c0 = arith.constant 0 : index
    %c0_0 = arith.constant 0 : index
    %0 = vector.load %arg1[%c0, %c0_0] : memref<8x128xf32, #tpu.memory_space<vmem>>, vector<8x128xf32>
    %c0_1 = arith.constant 0 : index
    %c0_2 = arith.constant 0 : index
    %c0_3 = arith.constant 0 : index
    %1 = vector.load %arg2[%c0_1, %c0_2, %c0_3] : memref<12x8x128xf32, #tpu.memory_space<vmem>>, vector<4x8x128xf32>
    %c4 = arith.constant 4 : index
    %c0_4 = arith.constant 0 : index
    %c0_5 = arith.constant 0 : index
    %2 = vector.load %arg2[%c4, %c0_4, %c0_5] : memref<12x8x128xf32, #tpu.memory_space<vmem>>, vector<4x8x128xf32>
    %c8 = arith.constant 8 : index
    %c0_6 = arith.constant 0 : index
    %c0_7 = arith.constant 0 : index
    %3 = vector.load %arg2[%c8, %c0_6, %c0_7] : memref<12x8x128xf32, #tpu.memory_space<vmem>>, vector<4x8x128xf32>
    %cst = arith.constant 0.000000e+00 : f32
    %4 = vector.broadcast %cst : f32 to vector<4x8x128xf32>
    %5 = arith.maximumf %1, %4 : vector<4x8x128xf32>
    %6 = math.absf %1 : vector<4x8x128xf32>
    %cst_8 = arith.constant 0.000000e+00 : f32
    %7 = vector.broadcast %cst_8 : f32 to vector<4x8x128xf32>
    %8 = arith.subf %7, %6 : vector<4x8x128xf32>
    %9 = math.exp %8 : vector<4x8x128xf32>
    %10 = math.log1p %9 : vector<4x8x128xf32>
    %11 = arith.addf %5, %10 : vector<4x8x128xf32>
    %cst_9 = arith.constant 9.99999997E-7 : f32
    %12 = vector.broadcast %cst_9 : f32 to vector<4x8x128xf32>
    %13 = arith.addf %11, %12 : vector<4x8x128xf32>
    %cst_10 = arith.constant dense<0xFF800000> : vector<8x128xf32>
    %14 = vector.multi_reduction <maximumf>, %3, %cst_10 [0] : vector<4x8x128xf32> to vector<8x128xf32>
    %15 = vector.shape_cast %14 : vector<8x128xf32> to vector<1x8x128xf32>
    %16 = vector.broadcast %15 : vector<1x8x128xf32> to vector<4x8x128xf32>
    %17 = arith.subf %3, %16 : vector<4x8x128xf32>
    %18 = math.exp %17 : vector<4x8x128xf32>
    %cst_11 = arith.constant dense<0.000000e+00> : vector<8x128xf32>
    %19 = vector.multi_reduction <add>, %18, %cst_11 [0] : vector<4x8x128xf32> to vector<8x128xf32>
    %20 = vector.shape_cast %0 : vector<8x128xf32> to vector<1x8x128xf32>
    %21 = vector.broadcast %20 : vector<1x8x128xf32> to vector<4x8x128xf32>
    %22 = arith.mulf %13, %21 : vector<4x8x128xf32>
    %23 = arith.addf %22, %2 : vector<4x8x128xf32>
    %cst_12 = arith.constant 5.000000e-01 : f32
    %24 = vector.broadcast %cst_12 : f32 to vector<4x8x128xf32>
    %25 = arith.mulf %24, %23 : vector<4x8x128xf32>
    %26 = math.tanh %25 : vector<4x8x128xf32>
    %cst_13 = arith.constant 1.000000e+00 : f32
    %27 = vector.broadcast %cst_13 : f32 to vector<4x8x128xf32>
    %28 = arith.addf %26, %27 : vector<4x8x128xf32>
    %cst_14 = arith.constant 5.000000e-01 : f32
    %29 = vector.broadcast %cst_14 : f32 to vector<4x8x128xf32>
    %30 = arith.mulf %29, %28 : vector<4x8x128xf32>
    %31 = arith.mulf %18, %30 : vector<4x8x128xf32>
    %cst_15 = arith.constant dense<0.000000e+00> : vector<8x128xf32>
    %32 = vector.multi_reduction <add>, %31, %cst_15 [0] : vector<4x8x128xf32> to vector<8x128xf32>
    %33 = arith.divf %32, %19 : vector<8x128xf32>
    %cst_16 = arith.constant 0.999998986 : f32
    %34 = vector.broadcast %cst_16 : f32 to vector<8x128xf32>
    %35 = arith.mulf %33, %34 : vector<8x128xf32>
    %cst_17 = arith.constant 5.000000e-07 : f32
    %36 = vector.broadcast %cst_17 : f32 to vector<8x128xf32>
    %37 = arith.addf %35, %36 : vector<8x128xf32>
    %38 = math.log %37 : vector<8x128xf32>
    %cst_18 = arith.constant 0.000000e+00 : f32
    %39 = vector.broadcast %cst_18 : f32 to vector<8x128xf32>
    %40 = arith.subf %39, %37 : vector<8x128xf32>
    %41 = math.log1p %40 : vector<8x128xf32>
    %42 = arith.subf %38, %41 : vector<8x128xf32>
    %c0_19 = arith.constant 0 : index
    %c0_20 = arith.constant 0 : index
    %43 = vector.load %arg3[%c0_19, %c0_20] : memref<8x128xf32, #tpu.memory_space<vmem>>, vector<8x128xf32>
    tpu.vector_store %arg3[%c0_19, %c0_20], %42 {strides = array<i32>} : memref<8x128xf32, #tpu.memory_space<vmem>>, vector<8x128xf32>,
    return
  }
  func.func @transform_0(%arg0: i32) -> (i32, i32) {
    %c0_i32 = arith.constant 0 : i32
    %c0_i32_0 = arith.constant 0 : i32
    return %arg0, %c0_i32 : i32, i32
  }
  func.func @transform_1(%arg0: i32) -> (i32, i32, i32) {
    %c0_i32 = arith.constant 0 : i32
    %c0_i32_0 = arith.constant 0 : i32
    %c0_i32_1 = arith.constant 0 : i32
    return %c0_i32, %arg0, %c0_i32_0 : i32, i32, i32
  }
  func.func @transform_2(%arg0: i32) -> (i32, i32) {
    %c0_i32 = arith.constant 0 : i32
    %c0_i32_0 = arith.constant 0 : i32
    return %arg0, %c0_i32 : i32, i32
  }
}

</mosaic_0001>

<bundles_post_ra>
// kernel: tpu_custom_call.1
= control target key start
LH: loop header
LB: loop body
LE: loop exit
PB: predicated region body
PF: predicated region fallthrough
CT: control target
= control target key end

     0   :  { %7 = vsyncpa [#allocation3], 0  ;;  %s406_s0 = inlined_call_operand.hbm [shape: f32[8,128], index: 0, kind: input, shape index: {}]   ;;  %s407_s1 = inlined_call_operand.hbm [shape: f32[12,8,128], index: 1, kind: input, shape index: {}]   ;;  %s408_s2 = inlined_call_operand.hbm [shape: f32[8,128], index: 2, kind: output, shape index: {}]  }
   0x1   :  { %8 = vsyncpa [#allocation6], 0 }
   0x2   :  { %9 = vsyncpa [#allocation4], 0  ;;  %s315_s9 = smov [#allocation2]   ;;  %s316_s11 = smov [#allocation5]  }
   0x3   :  { %s16_s10 = sshll.u32 %s315_s9, 4  ;;  %s25_s12 = sshll.u32 %s316_s11, 4  ;;  %s17_s10 = int_to_ptr.vmem [resolvable:$true] %s16_s10  ;;  %s335_s12 = int_to_ptr.vmem [resolvable:$true] %s25_s12 }
   0x4   :  { %s243_s15 = scalar_lea.hbm %s406_s0, 128 }
   0x5   :  { %p244_p0 = scmp.ne.s32.totalorder %s406_s0, %s243_s15  ;;  %p247_p1 = scmp.lt.u32.totalorder %s243_s15, %s406_s0 }
   0x7   :  { %p249_p2 = pnand %p247_p1, %p244_p0 }
   0x9   :  { %252 = shalt.err (!%p249_p2)
}
   0xa   :  { %s253_s20 = scalar_lea.vmem %s17_s10, 128  ;;  %p258_p4 = scmp.lt.s32.totalorder %s17_s10, %s17_s10 }
   0xb   :  { %p254_p3 = scmp.ne.s32.totalorder %s17_s10, %s253_s20  ;;  %p259_p5 = scmp.lt.s32.totalorder %s253_s20, %s253_s20 }
   0xd   :  { %p260_p6 = por %p259_p5, %p258_p4 }
   0xf   :  { %p261_p7 = pnand %p260_p6, %p254_p3 }
  0x11   :  { %264 = shalt.err (!%p261_p7)
}
  0x12   :  { %19 = dma.hbm_to_vmem [thread:$0]  %s406_s0, 128, %s17_s10, [#allocation3]  }
  0x13   :  { %s265_s25 = scalar_lea.hbm %s407_s1, 1536 }
  0x14   :  { %p266_p8 = scmp.ne.s32.totalorder %s407_s1, %s265_s25  ;;  %p269_p9 = scmp.lt.u32.totalorder %s265_s25, %s407_s1 }
  0x16   :  { %p271_p10 = pnand %p269_p9, %p266_p8 }
  0x18   :  { %274 = shalt.err (!%p271_p10)
}
  0x19   :  { %s275_s30 = scalar_lea.vmem %s335_s12, 1536  ;;  %p280_p12 = scmp.lt.s32.totalorder %s335_s12, %s335_s12 }
  0x1a   :  { %p276_p11 = scmp.ne.s32.totalorder %s335_s12, %s275_s30  ;;  %p281_p13 = scmp.lt.s32.totalorder %s275_s30, %s275_s30 }
  0x1c   :  { %p282_p0 = por %p281_p13, %p280_p12 }
  0x1e   :  { %p283_p1 = pnand %p282_p0, %p276_p11 }
  0x20   :  { %286 = shalt.err (!%p283_p1)
}
  0x21   :  { %s317_s0 = smov 128   ;;  %s318_s3 = smov 8  }
  0x22   :  { %31 = dma.hbm_to_vmem [thread:$0]  %s407_s1, 1536, %s335_s12, [#allocation6], %s317_s0, %s317_s0, %s318_s3  }
  0x23   :  { %309 = dma.done.wait [#allocation3], 128  }
  0x24   :  { %310 = vsyncadd [#allocation3], 4294967168 }
  0x25   :  { %311 = dma.done.wait [#allocation6], 1536  }
  0x26   :  { %312 = vsyncadd [#allocation6], 4294965760  ;;  %v366_v0 = vld [vmem:[#allocation5] sm:$0xff]  ;;  %v368_v1 = vld [vmem:[#allocation5 + $0x8] sm:$0xff]  ;;  %s319_s1 = smov [#allocation7]  }
  0x27   :  { %v370_v2 = vld [vmem:[#allocation5 + $0x10] sm:$0xff]  ;;  %v372_v3 = vld [vmem:[#allocation5 + $0x18] sm:$0xff]  ;;  %v57_v4 = vand.u32 2147483647, %v366_v0  ;;  %v58_v5 = vand.u32 2147483647, %v368_v1 }
  0x28   :  { %v59_v6 = vand.u32 2147483647, %v370_v2  ;;  %v60_v7 = vand.u32 2147483647, %v372_v3  ;;  %v49_v16 = vld [vmem:[#allocation5 + $0x40] sm:$0xff]  ;;  %v50_v17 = vld [vmem:[#allocation5 + $0x48] sm:$0xff] }
  0x29   :  { %v61_v8 = vsub.f32 0.0, %v57_v4  ;;  %v62_v9 = vsub.f32 0.0, %v58_v5  ;;  %v51_v18 = vld [vmem:[#allocation5 + $0x50] sm:$0xff]  ;;  %v52_v19 = vld [vmem:[#allocation5 + $0x58] sm:$0xff]  ;;  %v117_v20 = vmax.f32 %v49_v16, %v50_v17  ;;  %v53_v45 = vmax.f32 %v366_v0, 0.0  ;;  %s190_s6 = sshll.u32 %s319_s1, 4  ;;  %s191_s6 = int_to_ptr.vmem [resolvable:$true] %s190_s6 }
  0x2a   :  { %v63_v10 = vsub.f32 0.0, %v59_v6  ;;  %v64_v11 = vsub.f32 0.0, %v60_v7  ;;  %v118_v21 = vmax.f32 %v51_v18, %v52_v19  ;;  %v54_v56 = vmax.f32 %v368_v1, 0.0  ;;  %s287_s7 = scalar_lea.vmem %s191_s6, 128  ;;  %p292_p3 = scmp.lt.s32.totalorder %s191_s6, %s191_s6 }
  0x2b   :  { %v65_v12 = vmul.f32 1.442695, %v61_v8  ;;  %v67_v13 = vmul.f32 1.442695, %v62_v9  ;;  %v55_v61 = vmax.f32 %v370_v2, 0.0  ;;  %v56_v62 = vmax.f32 %v372_v3, 0.0  ;;  %p288_p2 = scmp.ne.s32.totalorder %s191_s6, %s287_s7  ;;  %p293_p4 = scmp.lt.s32.totalorder %s287_s7, %s287_s7 }
  0x2c   :  { %v69_v14 = vmul.f32 1.442695, %v63_v10  ;;  %v71_v15 = vmul.f32 1.442695, %v64_v11  ;;  %v119_v23 = vmax.f32 %v117_v20, %v118_v21  ;;  %v38_v9 = vld [vmem:[#allocation2] sm:$0xff]  ;;  %v46_v21 = vld [vmem:[#allocation5 + $0x30] sm:$0xff] }
  0x2d   :  { %205 = vpow2.f32 %v65_v12  ;;  %p294_p5 = por %p293_p4, %p292_p3 }
  0x2e   :  { %207 = vpow2.f32 %v67_v13  ;;  %v120_v31 = vsub.f32 %v49_v16, %v119_v23  ;;  %v121_v34 = vsub.f32 %v50_v17, %v119_v23  ;;  %v122_v38 = vsub.f32 %v51_v18, %v119_v23  ;;  %v44_v13 = vld [vmem:[#allocation5 + $0x20] sm:$0xff]  ;;  %v45_v16 = vld [vmem:[#allocation5 + $0x28] sm:$0xff] }
  0x2f   :  { %209 = vpow2.f32 %v69_v14  ;;  %v123_v47 = vsub.f32 %v52_v19, %v119_v23  ;;  %p295_p6 = pnand %p294_p5, %p288_p2 }
  0x30   :  { %211 = vpow2.f32 %v71_v15  ;;  %v124_v39 = vmul.f32 1.442695, %v120_v31  ;;  %v126_v42 = vmul.f32 1.442695, %v121_v34  ;;  %v128_v50 = vmul.f32 1.442695, %v122_v38 }
  0x31   :  { %v130_v6 = vmul.f32 1.442695, %v123_v47 }
  0x37   :  { %v206_v22 = vpop.eup %205 }
  0x38   :  { %v208_v24 = vpop.eup %207  ;;  %v73_v25 = vadd.f32 1.0, %v206_v22  ;;  %v76_v30 = vmul.f32 -0.5, %v206_v22  ;;  %v79_v40 = vand.u32 2147483647, %v206_v22 }
  0x39   :  { %v210_v26 = vpop.eup %209  ;;  %v82_v27 = vadd.f32 1.0, %v208_v24  ;;  %v85_v32 = vmul.f32 -0.5, %v208_v24  ;;  %v88_v43 = vand.u32 2147483647, %v208_v24 }
  0x3a   :  { %v212_v28 = vpop.eup %211  ;;  %213 = vlog2.f32 %v73_v25  ;;  %v91_v29 = vadd.f32 1.0, %v210_v26  ;;  %v94_v35 = vmul.f32 -0.5, %v210_v26  ;;  %v77_v36 = vadd.f32 1.0, %v76_v30 }
  0x3b   :  { %215 = vlog2.f32 %v82_v27  ;;  %v100_v33 = vadd.f32 1.0, %v212_v28  ;;  %v103_v37 = vmul.f32 -0.5, %v212_v28  ;;  %v86_v41 = vadd.f32 1.0, %v85_v32  ;;  %v47_v27 = vld [vmem:[#allocation5 + $0x38] sm:$0xff] }
  0x3c   :  { %217 = vlog2.f32 %v91_v29  ;;  %v95_v44 = vadd.f32 1.0, %v94_v35  ;;  %v97_v46 = vand.u32 2147483647, %v210_v26  ;;  %v78_v48 = vmul.f32 %v206_v22, %v77_v36 }
  0x3d   :  { %219 = vlog2.f32 %v100_v33  ;;  %v104_v49 = vadd.f32 1.0, %v103_v37  ;;  %vm379_vm0 = vcmp.lt.f32.partialorder %v79_v40, 0.0004427343  ;;  %v87_v53 = vmul.f32 %v208_v24, %v86_v41 }
  0x3e   :  { %221 = vpow2.f32 %v124_v39  ;;  %v106_v54 = vand.u32 2147483647, %v212_v28  ;;  %vm384_vm1 = vcmp.lt.f32.partialorder %v88_v43, 0.0004427343  ;;  %v96_v59 = vmul.f32 %v210_v26, %v95_v44 }
  0x3f   :  { %223 = vpow2.f32 %v126_v42  ;;  %vm98_vm2 = vcmp.lt.f32.partialorder %v97_v46, 0.0004427343  ;;  %v105_v5 = vmul.f32 %v212_v28, %v104_v49 }
  0x40   :  { %vm107_vm3 = vcmp.lt.f32.partialorder %v106_v54, 0.0004427343  ;;  %225 = vpow2.f32 %v128_v50 }
  0x41   :  { %227 = vpow2.f32 %v130_v6 }
  0x44   :  { %v214_v51 = vpop.eup %213 }
  0x45   :  { %v216_v55 = vpop.eup %215  ;;  %v75_v57 = vmul.f32 0.6931472, %v214_v51 }
  0x46   :  { %v218_v60 = vpop.eup %217  ;;  %v84_v63 = vmul.f32 0.6931472, %v216_v55 }
  0x47   :  { %v81_v0 = vsel %vm379_vm0, %v78_v48, %v75_v57  ;;  %v93_v4 = vmul.f32 0.6931472, %v218_v60  ;;  %v220_v1 = vpop.eup %219 }
  0x48   :  { %v90_v7 = vsel %vm384_vm1, %v87_v53, %v84_v63  ;;  %v109_v8 = vadd.f32 %v81_v0, %v53_v45  ;;  %v102_v2 = vmul.f32 0.6931472, %v220_v1  ;;  %v222_v20 = vpop.eup %221 }
  0x49   :  { %v99_v10 = vsel %vm98_vm2, %v96_v59, %v93_v4  ;;  %v110_v11 = vadd.f32 %v90_v7, %v54_v56  ;;  %v224_v23 = vpop.eup %223 }
  0x4a   :  { %v111_v3 = vadd.f32 %v99_v10, %v55_v61  ;;  %v113_v12 = vadd.f32 1e-06, %v109_v8  ;;  %v108_v14 = vsel %vm107_vm3, %v105_v5, %v102_v2  ;;  %v132_v32 = vadd.f32 %v224_v23, %v222_v20  ;;  %v226_v34 = vpop.eup %225 }
  0x4b   :  { %v114_v15 = vadd.f32 1e-06, %v110_v11  ;;  %v112_v17 = vadd.f32 %v108_v14, %v56_v62  ;;  %v228_v39 = vpop.eup %227 }
  0x4c   :  { %v115_v18 = vadd.f32 1e-06, %v111_v3  ;;  %v135_v19 = vmul.f32 %v113_v12, %v38_v9  ;;  %v133_v38 = vadd.f32 %v226_v34, %v132_v32 }
  0x4d   :  { %v136_v22 = vmul.f32 %v114_v15, %v38_v9  ;;  %v116_v24 = vadd.f32 1e-06, %v112_v17 }
  0x4e   :  { %v137_v25 = vmul.f32 %v115_v18, %v38_v9  ;;  %v139_v26 = vadd.f32 %v135_v19, %v44_v13  ;;  %v134_v40 = vadd.f32 %v228_v39, %v133_v38 }
  0x4f   :  { %v140_v28 = vadd.f32 %v136_v22, %v45_v16  ;;  %v138_v29 = vmul.f32 %v116_v24, %v38_v9 }
  0x50   :  { %v141_v30 = vadd.f32 %v137_v25, %v46_v21  ;;  %v143_v31 = vmul.f32 0.5, %v139_v26 }
  0x51   :  { %v144_v33 = vmul.f32 0.5, %v140_v28  ;;  %v142_v35 = vadd.f32 %v138_v29, %v47_v27 }
  0x52   :  { %v145_v36 = vmul.f32 0.5, %v141_v30  ;;  %229 = vtanh.f32 %v143_v31 }
  0x53   :  { %231 = vtanh.f32 %v144_v33  ;;  %v146_v37 = vmul.f32 0.5, %v142_v35 }
  0x54   :  { %233 = vtanh.f32 %v145_v36 }
  0x55   :  { %235 = vtanh.f32 %v146_v37 }
  0x56   :  { %237 = vrcp.f32 %v134_v40 }
  0x5c   :  { %v230_v41 = vpop.eup %229 }
  0x5d   :  { %v232_v42 = vpop.eup %231  ;;  %v151_v43 = vadd.f32 1.0, %v230_v41 }
  0x5e   :  { %v234_v44 = vpop.eup %233  ;;  %v152_v45 = vadd.f32 1.0, %v232_v42 }
  0x5f   :  { %v153_v46 = vadd.f32 1.0, %v234_v44  ;;  %v155_v47 = vmul.f32 0.5, %v151_v43  ;;  %v236_v48 = vpop.eup %235 }
  0x60   :  { %v156_v49 = vmul.f32 0.5, %v152_v45  ;;  %v154_v50 = vadd.f32 1.0, %v236_v48  ;;  %v238_v59 = vpop.eup %237 }
  0x61   :  { %v157_v51 = vmul.f32 0.5, %v153_v46  ;;  %v159_v52 = vmul.f32 %v222_v20, %v155_v47 }
  0x62   :  { %v160_v53 = vmul.f32 %v224_v23, %v156_v49  ;;  %v158_v54 = vmul.f32 0.5, %v154_v50 }
  0x63   :  { %v161_v55 = vmul.f32 %v226_v34, %v157_v51 }
  0x64   :  { %v163_v56 = vadd.f32 %v160_v53, %v159_v52  ;;  %v162_v57 = vmul.f32 %v228_v39, %v158_v54 }
  0x66   :  { %v164_v58 = vadd.f32 %v163_v56, %v161_v55 }
  0x68   :  { %v165_v60 = vadd.f32 %v164_v58, %v162_v57 }
  0x6a   :  { %v167_v61 = vmul.f32 %v238_v59, %v165_v60 }
  0x6c   :  { %v168_v62 = vmul.f32 0.999999, %v167_v61 }
  0x6e   :  { %v169_v63 = vadd.f32 5e-07, %v168_v62 }
  0x70   :  { %v172_v0 = vsub.f32 0.0, %v169_v63  ;;  %239 = vlog2.f32 %v169_v63 }
  0x72   :  { %v173_v4 = vadd.f32 1.0, %v172_v0  ;;  %v176_v5 = vmul.f32 -0.5, %v172_v0  ;;  %v179_v1 = vand.u32 2147483647, %v172_v0 }
  0x74   :  { %241 = vlog2.f32 %v173_v4  ;;  %v177_v6 = vadd.f32 1.0, %v176_v5  ;;  %vm180_vm4 = vcmp.lt.f32.partialorder %v179_v1, 0.0004427343 }
  0x76   :  { %v178_v8 = vmul.f32 %v177_v6, %v172_v0 }
  0x7a   :  { %v240_v7 = vpop.eup %239 }
  0x7b   :  { %v171_v10 = vmul.f32 0.6931472, %v240_v7 }
  0x7e   :  { %v242_v9 = vpop.eup %241 }
  0x7f   :  { %v175_v2 = vmul.f32 0.6931472, %v242_v9 }
  0x81   :  { %v181_v11 = vsel %vm180_vm4, %v178_v8, %v175_v2 }
  0x82   :  { %v182_v3 = vsub.f32 %v171_v10, %v181_v11 }
  0x84   :  { %183 = vst [vmem:[#allocation7] sm:$0xff] %v182_v3 }
  0x85   :  { %298 = shalt.err (!%p295_p6)
}
  0x86   :  { %s299_s10 = scalar_lea.hbm %s408_s2, 128 }
  0x87   :  { %p300_p7 = scmp.ne.s32.totalorder %s408_s2, %s299_s10  ;;  %p303_p8 = scmp.lt.u32.totalorder %s299_s10, %s408_s2 }
  0x89   :  { %p305_p9 = pnand %p303_p8, %p300_p7 }
  0x8b   :  { %308 = shalt.err (!%p305_p9)
}
  0x8c   :  { %193 = dma.vmem_to_hbm [thread:$0]  %s191_s6, 128, %s408_s2, [#allocation4]  }
  0x8d   :  { %313 = dma.done.wait [#allocation4], 128  }
  0x8e   :  { %314 = vsyncadd [#allocation4], 4294967168 }
  0x8f   :  { %197 = vsyncpa [#allocation3], 1 }
  0x90   :  { %198 = vsyncpa [#allocation6], 1 }
  0x91   :  { %199 = vsyncpa [#allocation4], 1 }

</bundles_post_ra>
